<compile_context>
chip_gen: v7x
topology: tpu7x:2x2x1
jax: 0.10.0
libtpu: 0.0.40
codegen_flags: <defaults>
</compile_context>

<pallas_src>
import functools

import jax
import jax.numpy as jnp
from jax.experimental import pallas as pl
from jax.experimental.pallas import tpu as pltpu


def _round_up(x, m):
    return (x + m - 1) // m * m


def _num_tensorcores_per_chip():
    """2 on v7x (2 TCs/chip), 1 on v5e/v6e/unknown. Best-effort, never raises."""
    try:
        kind = jax.devices()[0].device_kind.lower()
        if "v7" in kind:
            return 2
    except Exception:
        pass
    return 1


def _vmem_cap_bytes():
    """Generation-aware scoped-VMEM ceiling (leave compiler-scratch headroom)."""
    try:
        kind = jax.devices()[0].device_kind.lower()
        if "v5" in kind or "v6" in kind:
            return 96 << 20   # 128 MiB physical
    except Exception:
        pass
    return 48 << 20           # v7x: 64 MiB physical; also a safe default


def policy_net_kernel(x_ref, w1_ref, b1_ref, w2_ref, b2_ref, o_ref, *, action_dim):
    # fc1: (TB, obs) @ (obs, HID_P) + (1, HID_P), then ReLU. f32 accumulate.
    w1 = w1_ref[...]
    h = jnp.dot(x_ref[...].astype(w1.dtype), w1, preferred_element_type=jnp.float32)
    h = jnp.maximum(h + b1_ref[...], 0.0)

    # fc2: (TB, HID_P) @ (HID_P, ACT_P) + (1, ACT_P). f32 accumulate.
    w2 = w2_ref[...]
    logits = jnp.dot(h.astype(w2.dtype), w2, preferred_element_type=jnp.float32)
    logits = logits + b2_ref[...]

    # Numerically stable softmax over the last dim. Padded action columns carry
    # logits == 0 (padded weights/bias are zero); mask them to 0 AFTER the exp
    # so no inf/NaN specials enter the max/exp path. Exact divide (denominator
    # is only (TB, 1), so the exact reciprocal is essentially free and keeps
    # rows summing to 1 to f32 precision).
    m = jnp.max(logits, axis=-1, keepdims=True)
    col = jax.lax.broadcasted_iota(jnp.int32, logits.shape, 1)
    e = jnp.where(col < action_dim, jnp.exp(logits - m), 0.0)
    denom = jnp.sum(e, axis=-1, keepdims=True)
    o_ref[...] = (e / denom).astype(o_ref.dtype)


def prepare_policy_params(w1, b1, w2, b2, *, mxu_dtype=None):
    """Pad/cast the parameters ONCE (lane-dense hidden/action dims).

    Call this at init (or whenever the weights change), not per forward step.
    """
    obs_dim, hidden_dim = w1.shape
    hid_w2, action_dim = w2.shape
    assert hid_w2 == hidden_dim

    HID_P = _round_up(hidden_dim, 128)
    ACT_P = _round_up(action_dim, 128)

    if mxu_dtype is None:
        # bf16 MXU inputs only pay off once the net grows (v6e/v7x native rate,
        # halved weight VMEM/DMA); keep f32 at toy sizes.
        mxu_dtype = jnp.bfloat16 if hidden_dim >= 512 else jnp.dtype(w1.dtype)

    b1 = jnp.asarray(b1, jnp.float32).reshape(1, hidden_dim)
    b2 = jnp.asarray(b2, jnp.float32).reshape(1, action_dim)

    w1_p = jnp.zeros((obs_dim, HID_P), mxu_dtype).at[:, :hidden_dim].set(w1.astype(mxu_dtype))
    b1_p = jnp.zeros((1, HID_P), jnp.float32).at[:, :hidden_dim].set(b1)
    w2_p = jnp.zeros((HID_P, ACT_P), mxu_dtype).at[:hidden_dim, :action_dim].set(w2.astype(mxu_dtype))
    b2_p = jnp.zeros((1, ACT_P), jnp.float32).at[:, :action_dim].set(b2)

    return {
        "w1": w1_p, "b1": b1_p, "w2": w2_p, "b2": b2_p,
        "obs_dim": obs_dim, "hidden_dim": hidden_dim, "action_dim": action_dim,
    }


def policy_net_forward(x, params, *, block_b=512):
    """x: (B, obs_dim); params: output of prepare_policy_params (pre-padded)."""
    B, obs_dim = x.shape
    assert obs_dim == params["obs_dim"]
    action_dim = params["action_dim"]
    w1_p, b1_p, w2_p, b2_p = params["w1"], params["b1"], params["w2"], params["b2"]
    HID_P = w1_p.shape[1]
    ACT_P = w2_p.shape[1]
    dtype = x.dtype

    # Round the batch up to the sublane granule first, then pick the tile:
    # split into >=2 grid steps on 2-TC chips so "parallel" can shard cores.
    B8 = _round_up(B, 8)
    n_split = _num_tensorcores_per_chip() if B8 >= 16 else 1
    TB = min(block_b, max(8, _round_up(pl.cdiv(B8, n_split), 8)))
    B_P = _round_up(B8, TB)

    # Only materialize a padded copy of x if the batch actually needs padding.
    x_p = x if B_P == B else jnp.zeros((B_P, obs_dim), dtype).at[:B].set(x)

    grid = (B_P // TB,)
    kernel = functools.partial(policy_net_kernel, action_dim=action_dim)

    xb = jnp.dtype(dtype).itemsize
    wb = jnp.dtype(w1_p.dtype).itemsize

    # Advisory cost estimate so XLA schedules neighbors around the custom call.
    cost = pl.CostEstimate(
        flops=2 * B_P * (obs_dim * HID_P + HID_P * ACT_P),
        transcendentals=B_P * ACT_P,
        bytes_accessed=(B_P * obs_dim * xb + B_P * ACT_P * xb
                        + (obs_dim * HID_P + HID_P * ACT_P) * wb
                        + (HID_P + ACT_P) * 4),
    )

    # Honest VMEM budget: Pallas double-buffers every input (weights included,
    # even with a constant index_map), plus the double-buffered x/out tiles.
    vmem_bytes = (2 * TB * obs_dim * xb                       # x tiles
                  + 2 * TB * ACT_P * xb                       # out tiles
                  + 2 * (obs_dim * HID_P + HID_P * ACT_P) * wb  # resident weights (x2)
                  + 2 * (HID_P + ACT_P) * 4)                  # resident biases (x2)
    vmem_limit = int(min(max(vmem_bytes + (4 << 20), 8 << 20), _vmem_cap_bytes()))

    out_p = pl.pallas_call(
        kernel,
        out_shape=jax.ShapeDtypeStruct((B_P, ACT_P), dtype),
        grid=grid,
        in_specs=[
            # x tile: (TB, obs_dim) — last dim equals the full array extent, so
            # no lane padding needed; pipelined over the batch grid.
            pl.BlockSpec((TB, obs_dim), lambda i: (i, 0)),
            pl.BlockSpec((obs_dim, HID_P), lambda i: (0, 0)),   # w1, VMEM-resident
            pl.BlockSpec((1, HID_P), lambda i: (0, 0)),         # b1, VMEM-resident
            pl.BlockSpec((HID_P, ACT_P), lambda i: (0, 0)),     # w2, VMEM-resident
            pl.BlockSpec((1, ACT_P), lambda i: (0, 0)),         # b2, VMEM-resident
        ],
        out_specs=pl.BlockSpec((TB, ACT_P), lambda i: (i, 0)),  # lane-dense out tile
        compiler_params=pltpu.CompilerParams(
            dimension_semantics=("parallel",),
            vmem_limit_bytes=vmem_limit,
        ),
        cost_estimate=cost,
    )(x_p, w1_p, b1_p, w2_p, b2_p)

    return out_p[:B, :action_dim]


def init_params(key, obs_dim, hidden_dim, action_dim):
    # Mimic PyTorch nn.Linear default init: U(-1/sqrt(fan_in), 1/sqrt(fan_in)).
    k1, k2, k3, k4 = jax.random.split(key, 4)
    bound1 = 1.0 / jnp.sqrt(obs_dim)
    bound2 = 1.0 / jnp.sqrt(hidden_dim)
    w1 = jax.random.uniform(k1, (obs_dim, hidden_dim), jnp.float32, -bound1, bound1)
    b1 = jax.random.uniform(k2, (1, hidden_dim), jnp.float32, -bound1, bound1)
    w2 = jax.random.uniform(k3, (hidden_dim, action_dim), jnp.float32, -bound2, bound2)
    b2 = jax.random.uniform(k4, (1, action_dim), jnp.float32, -bound2, bound2)
    return w1, b1, w2, b2


def reference_forward(x, w1, b1, w2, b2):
    h = jnp.maximum(x @ w1 + b1, 0.0)
    logits = h @ w2 + b2
    return jax.nn.softmax(logits, axis=-1)


if __name__ == "__main__":
    # CartPole-like sizes: obs_dim=4, hidden_dim=32, action_dim=2, batch=8.
    B, obs_dim, hidden_dim, action_dim = 8, 4, 32, 2

    key = jax.random.PRNGKey(0)
    kx, kp = jax.random.split(key)
    x = jax.random.normal(kx, (B, obs_dim), jnp.float32)
    w1, b1, w2, b2 = init_params(kp, obs_dim, hidden_dim, action_dim)

    # Pad/cast parameters ONCE (not per call).
    params = prepare_policy_params(w1, b1, w2, b2)

    out = policy_net_forward(x, params)
    out = jax.block_until_ready(out)

    ref = reference_forward(x, w1, b1, w2, b2)
    assert out.shape == (B, action_dim)
    # Exact f32 divide -> tight tolerances.
    assert jnp.allclose(out, ref, atol=1e-5, rtol=1e-5)
    assert jnp.allclose(jnp.sum(out, axis=-1), 1.0, atol=1e-5)

    print("KERNEL_OK")
</pallas_src>

<mosaic_0001>
module attributes {stable_mosaic.version = 11 : i64} {
  func.func @policy_net_kernel(%arg0: i32, %arg1: memref<8x4xf32, #tpu.memory_space<vmem>>, %arg2: memref<4x128xf32, #tpu.memory_space<vmem>>, %arg3: memref<1x128xf32, #tpu.memory_space<vmem>>, %arg4: memref<128x128xf32, #tpu.memory_space<vmem>>, %arg5: memref<1x128xf32, #tpu.memory_space<vmem>>, %arg6: memref<8x128xf32, #tpu.memory_space<vmem>>) attributes {dimension_semantics = [#tpu.dimension_semantics<parallel>], iteration_bounds = array<i64: 1>, scalar_prefetch = 0 : i64, scratch_operands = 0 : i64, tpu.core_type = #tpu.core_type<tc>, window_params = [{transform_indices = @transform_0, window_bounds = array<i64: 8, 4>}, {pipeline_mode = #tpu.pipeline_mode<synchronous>, transform_indices = @transform_1, window_bounds = array<i64: 4, 128>}, {pipeline_mode = #tpu.pipeline_mode<synchronous>, transform_indices = @transform_2, window_bounds = array<i64: 1, 128>}, {pipeline_mode = #tpu.pipeline_mode<synchronous>, transform_indices = @transform_3, window_bounds = array<i64: 128, 128>}, {pipeline_mode = #tpu.pipeline_mode<synchronous>, transform_indices = @transform_4, window_bounds = array<i64: 1, 128>}, {transform_indices = @transform_5, window_bounds = array<i64: 8, 128>}]} {
    %c0 = arith.constant 0 : index
    %c0_0 = arith.constant 0 : index
    %0 = vector.load %arg2[%c0, %c0_0] : memref<4x128xf32, #tpu.memory_space<vmem>>, vector<4x128xf32>
    %c0_1 = arith.constant 0 : index
    %c0_2 = arith.constant 0 : index
    %1 = vector.load %arg1[%c0_1, %c0_2] : memref<8x4xf32, #tpu.memory_space<vmem>>, vector<8x4xf32>
    %cst = arith.constant dense<0.000000e+00> : vector<8x128xf32>
    %2 = tpu.matmul %1, %0, %cst {dimension_numbers = #tpu.dot_dimension_numbers<[1], [0], [0], [1], [0, 0, 1, 1], [], []>} : vector<8x4xf32>, vector<4x128xf32>, vector<8x128xf32> -> vector<8x128xf32>
    %c0_3 = arith.constant 0 : index
    %c0_4 = arith.constant 0 : index
    %3 = vector.load %arg3[%c0_3, %c0_4] : memref<1x128xf32, #tpu.memory_space<vmem>>, vector<1x128xf32>
    %4 = vector.broadcast %3 : vector<1x128xf32> to vector<8x128xf32>
    %5 = arith.addf %2, %4 : vector<8x128xf32>
    %cst_5 = arith.constant 0.000000e+00 : f32
    %6 = vector.broadcast %cst_5 : f32 to vector<8x128xf32>
    %7 = arith.maximumf %5, %6 : vector<8x128xf32>
    %c0_6 = arith.constant 0 : index
    %c0_7 = arith.constant 0 : index
    %8 = vector.load %arg4[%c0_6, %c0_7] : memref<128x128xf32, #tpu.memory_space<vmem>>, vector<128x128xf32>
    %cst_8 = arith.constant dense<0.000000e+00> : vector<8x128xf32>
    %9 = tpu.matmul %7, %8, %cst_8 {dimension_numbers = #tpu.dot_dimension_numbers<[1], [0], [0], [1], [0, 0, 1, 1], [], []>} : vector<8x128xf32>, vector<128x128xf32>, vector<8x128xf32> -> vector<8x128xf32>
    %c0_9 = arith.constant 0 : index
    %c0_10 = arith.constant 0 : index
    %10 = vector.load %arg5[%c0_9, %c0_10] : memref<1x128xf32, #tpu.memory_space<vmem>>, vector<1x128xf32>
    %11 = vector.broadcast %10 : vector<1x128xf32> to vector<8x128xf32>
    %12 = arith.addf %9, %11 : vector<8x128xf32>
    %cst_11 = arith.constant dense<0xFF800000> : vector<8xf32>
    %13 = vector.multi_reduction <maximumf>, %12, %cst_11 [1] : vector<8x128xf32> to vector<8xf32>
    %14 = vector.shape_cast %13 : vector<8xf32> to vector<8x1xf32>
    %15 = tpu.iota {dimensions = array<i32: 1>} : vector<8x128xi32>
    %c2_i32 = arith.constant 2 : i32
    %16 = vector.broadcast %c2_i32 : i32 to vector<8x128xi32>
    %17 = arith.cmpi slt, %15, %16 : vector<8x128xi32>
    %18 = vector.broadcast %14 : vector<8x1xf32> to vector<8x128xf32>
    %19 = arith.subf %12, %18 : vector<8x128xf32>
    %20 = math.exp %19 : vector<8x128xf32>
    %cst_12 = arith.constant 0.000000e+00 : f32
    %21 = vector.broadcast %cst_12 : f32 to vector<8x128xf32>
    %22 = arith.select %17, %20, %21 : vector<8x128xi1>, vector<8x128xf32>
    %cst_13 = arith.constant dense<0.000000e+00> : vector<8xf32>
    %23 = vector.multi_reduction <add>, %22, %cst_13 [1] : vector<8x128xf32> to vector<8xf32>
    %24 = vector.shape_cast %23 : vector<8xf32> to vector<8x1xf32>
    %25 = vector.broadcast %24 : vector<8x1xf32> to vector<8x128xf32>
    %26 = arith.divf %22, %25 : vector<8x128xf32>
    %c0_14 = arith.constant 0 : index
    %c0_15 = arith.constant 0 : index
    %27 = vector.load %arg6[%c0_14, %c0_15] : memref<8x128xf32, #tpu.memory_space<vmem>>, vector<8x128xf32>
    tpu.vector_store %arg6[%c0_14, %c0_15], %26 {strides = array<i32>} : memref<8x128xf32, #tpu.memory_space<vmem>>, vector<8x128xf32>,
    return
  }
  func.func @transform_0(%arg0: i32) -> (i32, i32) {
    %c0_i32 = arith.constant 0 : i32
    %c0_i32_0 = arith.constant 0 : i32
    return %arg0, %c0_i32 : i32, i32
  }
  func.func @transform_1(%arg0: i32) -> (i32, i32) {
    %c0_i32 = arith.constant 0 : i32
    %c0_i32_0 = arith.constant 0 : i32
    %c0_i32_1 = arith.constant 0 : i32
    return %c0_i32, %c0_i32_0 : i32, i32
  }
  func.func @transform_2(%arg0: i32) -> (i32, i32) {
    %c0_i32 = arith.constant 0 : i32
    %c0_i32_0 = arith.constant 0 : i32
    %c0_i32_1 = arith.constant 0 : i32
    return %c0_i32, %c0_i32_0 : i32, i32
  }
  func.func @transform_3(%arg0: i32) -> (i32, i32) {
    %c0_i32 = arith.constant 0 : i32
    %c0_i32_0 = arith.constant 0 : i32
    %c0_i32_1 = arith.constant 0 : i32
    return %c0_i32, %c0_i32_0 : i32, i32
  }
  func.func @transform_4(%arg0: i32) -> (i32, i32) {
    %c0_i32 = arith.constant 0 : i32
    %c0_i32_0 = arith.constant 0 : i32
    %c0_i32_1 = arith.constant 0 : i32
    return %c0_i32, %c0_i32_0 : i32, i32
  }
  func.func @transform_5(%arg0: i32) -> (i32, i32) {
    %c0_i32 = arith.constant 0 : i32
    %c0_i32_0 = arith.constant 0 : i32
    return %arg0, %c0_i32 : i32, i32
  }
}

</mosaic_0001>

<bundles_post_ra>
// kernel: tpu_custom_call.1
= control target key start
LH: loop header
LB: loop body
LE: loop exit
PB: predicated region body
PF: predicated region fallthrough
CT: control target
= control target key end

     0   :  { %10 = vsyncpa [#allocation3], 0  ;;  %s464_s0 = inlined_call_operand.vmem [shape: f32[8,4], index: 0, kind: input, shape index: {}]   ;;  %s465_s1 = inlined_call_operand.vmem [shape: f32[4,128], index: 1, kind: input, shape index: {}]   ;;  %s466_s2 = inlined_call_operand.vmem [shape: f32[1,128], index: 2, kind: input, shape index: {}]   ;;  %s467_s3 = inlined_call_operand.hbm [shape: f32[128,128], index: 3, kind: input, shape index: {}]   ;;  %s468_s4 = inlined_call_operand.vmem [shape: f32[1,128], index: 4, kind: input, shape index: {}]   ;;  %s469_s5 = inlined_call_operand.hbm [shape: f32[8,128], index: 5, kind: output, shape index: {}]  }
   0x1   :  { %11 = vsyncpa [#allocation4], 0  ;;  %s391_s18 = smov [#allocation2]   ;;  %s343_s22 = scalar_lea.hbm %s467_s3, 2048 }
   0x2   :  { %s23_s19 = sshll.u32 %s391_s18, 4  ;;  %p344_p0 = scmp.ne.s32.totalorder %s467_s3, %s343_s22  ;;  %s24_s19 = int_to_ptr.vmem [resolvable:$true] %s23_s19 }
   0x3   :  { %p347_p1 = scmp.lt.u32.totalorder %s343_s22, %s467_s3 }
   0x5   :  { %p349_p2 = pnand %p347_p1, %p344_p0 }
   0x7   :  { %352 = shalt.err (!%p349_p2)
}
   0x8   :  { %s353_s27 = scalar_lea.vmem %s24_s19, 2048  ;;  %p358_p4 = scmp.lt.s32.totalorder %s24_s19, %s24_s19 }
   0x9   :  { %p354_p3 = scmp.ne.s32.totalorder %s24_s19, %s353_s27  ;;  %p359_p5 = scmp.lt.s32.totalorder %s353_s27, %s353_s27 }
   0xb   :  { %p360_p6 = por %p359_p5, %p358_p4 }
   0xd   :  { %p361_p7 = pnand %p360_p6, %p354_p3 }
   0xf   :  { %364 = shalt.err (!%p361_p7)
}
  0x10   :  { %s392_s28 = smov 128   ;;  %s393_s29 = smov 8  }
  0x11   :  { %29 = dma.hbm_to_vmem [thread:$0]  %s467_s3, 2048, %s24_s19, [#allocation3], %s392_s28, %s392_s28, %s393_s29  }
  0x12   :  { %387 = dma.done.wait [#allocation3], 2048  }
  0x13   :  { %388 = vsyncadd [#allocation3], 4294965248  ;;  %v394_v0 = vmov 0.0   ;;  %vm395_vm0 = vmmov 0   ;;  %v396_v1 = vmov 0.0|0.0   ;;  %vm48_vm1 = vcmask 1043456  }
  0x14   :  { %268 = vmatprep.subr.mxu0 %v394_v0  ;;  %270 = vmatprep.mubr.msk.f32.mxu0 %vm395_vm0, %v394_v0  ;;  %vm44_vm2 = vcmask 31744   ;;  %v35_v2 = vld [vmem:[%s465_s1] sm:$0xf]  ;;  %v124_v5 = vld [vmem:[#allocation2 + $0x8] sm:$0xff]  ;;  %v125_v6 = vld [vmem:[#allocation2 + $0x10] sm:$0xff]  ;;  %v218_v40 = vlaneseq }
  0x15   :  { %308 = vmatprep.subr.bf16.mxu1 %v396_v1  ;;  %305 = vmatprep.mubr.msk.f32.mxu1 %vm395_vm0, %v394_v0  ;;  %v36_v3 = vld [vmem:[%s464_s0] sm:$0xff]  ;;  %v126_v7 = vld [vmem:[#allocation2 + $0x18] sm:$0xff]  ;;  %v128_v11 = vld [vmem:[#allocation2 + $0x28] sm:$0xff] }
  0x16   :  { %v123_v4 = vld [vmem:[#allocation2] sm:$0xff]  ;;  %269 = vmatpush3.msk.msra.mxu0 %vm48_vm1, %v35_v2  ;;  %v312_v9 = vpack.c.bf16 %v126_v7, %v125_v6  ;;  %v129_v13 = vld [vmem:[#allocation2 + $0x30] sm:$0xff]  ;;  %v130_v14 = vld [vmem:[#allocation2 + $0x38] sm:$0xff]  ;;  %v219_v41 = vand.u32 127, %v218_v40 }
  0x17   :  { %271 = vmatmul.mubr.msk.f32.vlgmr.msra.gmra.mrb[0].mxu0 %vm44_vm2, %v36_v3  ;;  %v309_v8 = vpack.c.bf16 %v124_v5, %v123_v4  ;;  %v127_v10 = vld [vmem:[#allocation2 + $0x20] sm:$0xff]  ;;  %v318_v15 = vpack.c.bf16 %v130_v14, %v129_v13  ;;  %v132_v17 = vld [vmem:[#allocation2 + $0x48] sm:$0xff]  ;;  %v133_v19 = vld [vmem:[#allocation2 + $0x50] sm:$0xff] }
  0x18   :  { %v315_v12 = vpack.c.bf16 %v128_v11, %v127_v10  ;;  %v131_v16 = vld [vmem:[#allocation2 + $0x40] sm:$0xff]  ;;  %v134_v20 = vld [vmem:[#allocation2 + $0x58] sm:$0xff]  ;;  %v136_v23 = vld [vmem:[#allocation2 + $0x68] sm:$0xff]  ;;  %vm220_vm3 = vcmp.lt.s32.totalorder %v219_v41, 2 }
  0x19   :  { %310 = vmatpush3.bf16.msra.mxu1 %v309_v8  ;;  %v321_v18 = vpack.c.bf16 %v132_v17, %v131_v16  ;;  %v324_v21 = vpack.c.bf16 %v134_v20, %v133_v19  ;;  %v135_v22 = vld [vmem:[#allocation2 + $0x60] sm:$0xff]  ;;  %v137_v25 = vld [vmem:[#allocation2 + $0x70] sm:$0xff]  ;;  %v138_v26 = vld [vmem:[#allocation2 + $0x78] sm:$0xff] }
  0x1a   :  { %311 = vmatprep.subr.bf16.mxu1 %v396_v1  ;;  %v327_v24 = vpack.c.bf16 %v136_v23, %v135_v22  ;;  %v330_v27 = vpack.c.bf16 %v138_v26, %v137_v25  ;;  %v245_v28 = vld [vmem:[%s466_s2] ss:$0 sm:$0xff]  ;;  %s397_s2 = smov [#allocation5]  }
  0x1b   :  { %v248_v33 = vld [vmem:[%s468_s4] ss:$0 sm:$0xff]  ;;  %s236_s12 = sshll.u32 %s397_s2, 4  ;;  %s237_s12 = int_to_ptr.vmem [resolvable:$true] %s236_s12 }
  0x1c   :  { %s365_s4 = scalar_lea.vmem %s237_s12, 128  ;;  %p370_p9 = scmp.lt.s32.totalorder %s237_s12, %s237_s12 }
  0x1d   :  { %313 = vmatpush3.bf16.msra.mxu1 %v312_v9  ;;  %p366_p8 = scmp.ne.s32.totalorder %s237_s12, %s365_s4  ;;  %p371_p10 = scmp.lt.s32.totalorder %s365_s4, %s365_s4 }
  0x1e   :  { %314 = vmatprep.subr.bf16.mxu1 %v396_v1 }
  0x1f   :  { %p372_p11 = por %p371_p10, %p370_p9 }
  0x21   :  { %316 = vmatpush3.bf16.msra.mxu1 %v315_v12  ;;  %p373_p12 = pnand %p372_p11, %p366_p8 }
  0x22   :  { %317 = vmatprep.subr.bf16.mxu1 %v396_v1 }
  0x25   :  { %319 = vmatpush3.bf16.msra.mxu1 %v318_v15 }
  0x26   :  { %320 = vmatprep.subr.bf16.mxu1 %v396_v1 }
  0x29   :  { %322 = vmatpush3.bf16.msra.mxu1 %v321_v18 }
  0x2a   :  { %323 = vmatprep.subr.bf16.mxu1 %v396_v1 }
  0x2d   :  { %325 = vmatpush3.bf16.msra.mxu1 %v324_v21 }
  0x2e   :  { %326 = vmatprep.subr.bf16.mxu1 %v396_v1 }
  0x31   :  { %328 = vmatpush3.bf16.msra.mxu1 %v327_v24 }
  0x32   :  { %329 = vmatprep.subr.bf16.mxu1 %v396_v1 }
  0x35   :  { %331 = vmatpush3.bf16.msra.mxu1 %v330_v27 }
  0xea   :  { %v118_v29 = vpop.f32.mrb[0].mxu0 }
  0xeb   :  { %v119_v30 = vadd.f32 %v245_v28, %v118_v29  ;;  %v272_v31 = vpop.f32.mrb[1].mxu0 }
  0xed   :  { %v122_v32 = vmax.f32 %v119_v30, 0.0 }
  0xef   :  { %306 = vmatmul.mubr.f32.vlgmr.msra.gmra.mrb[0].mxu1 %v122_v32 }
 0x1c2   :  { %v212_v34 = vpop.f32.mrb[0].mxu1 }
 0x1c3   :  { %v213_v35 = vadd.f32 %v248_v33, %v212_v34  ;;  %v307_v36 = vpop.f32.mrb[1].mxu1 }
 0x1c5   :  { %216 = vmax.xlane.f32.xlu0 %v213_v35 }
 0x252   :  { %v217_v37 = vpop.xlane.xlu0 %216 }
 0x253   :  { %v221_v38 = vsub.f32 %v213_v35, %v217_v37 }
 0x255   :  { %v222_v39 = vmul.f32 1.442695, %v221_v38 }
 0x257   :  { %339 = vpow2.f32 %v222_v39 }
 0x261   :  { %v340_v42 = vpop.eup %339 }
 0x262   :  { %v224_v43 = vsel %vm220_vm3, %v340_v42, 0.0 }
 0x263   :  { %225 = vadd.xlane.f32.xlu0 %v224_v43 }
 0x2f0   :  { %v226_v44 = vpop.xlane.xlu0 %225 }
 0x2f1   :  { %341 = vrcp.f32 %v226_v44 }
 0x2fb   :  { %v342_v45 = vpop.eup %341 }
 0x2fc   :  { %v228_v46 = vmul.f32 %v342_v45, %v224_v43 }
 0x2fe   :  { %229 = vst [vmem:[#allocation5] sm:$0xff] %v228_v46 }
 0x2ff   :  { %376 = shalt.err (!%p373_p12)
}
 0x300   :  { %s377_s15 = scalar_lea.hbm %s469_s5, 128 }
 0x301   :  { %p378_p13 = scmp.ne.s32.totalorder %s469_s5, %s377_s15  ;;  %p381_p0 = scmp.lt.u32.totalorder %s377_s15, %s469_s5 }
 0x303   :  { %p383_p1 = pnand %p381_p0, %p378_p13 }
 0x305   :  { %386 = shalt.err (!%p383_p1)
}
 0x306   :  { %239 = dma.vmem_to_hbm [thread:$0]  %s237_s12, 128, %s469_s5, [#allocation4]  }
 0x307   :  { %389 = dma.done.wait [#allocation4], 128  }
 0x308   :  { %390 = vsyncadd [#allocation4], 4294967168 }
 0x309   :  { %243 = vsyncpa [#allocation3], 1 }
 0x30a   :  { %244 = vsyncpa [#allocation4], 1 }

</bundles_post_ra>
